<compile_context>
chip_gen: v6e
topology: v6e:2x2x1
jax: 0.10.0
libtpu: 0.0.40
codegen_flags: <defaults>
</compile_context>

<pallas_src>
from collections import defaultdict
from functools import partial

import numpy as np
import jax
import jax.numpy as jnp
from jax.experimental import pallas as pl
from jax.experimental.pallas import tpu as pltpu


_LANE = 128                            # TPU vreg lane width
_PER_BUFFER_BYTES = 2 * 1024 * 1024    # ~2 MiB of data per input buffer per grid step
_VMEM_LIMIT_BYTES = 32 * 1024 * 1024   # explicit scoped-VMEM limit (safe on v5e/v6e/v7x)


def _round_up(x, m):
    return ((x + m - 1) // m) * m


def _pick_tile_rows(rows_total, padded_bytes_per_row, *, min_rows=8, multiple=8):
    """Rows per grid step from a VMEM byte budget.

    Guarantees >=2 grid steps whenever there is enough work so that both of
    v7x's TensorCores get a share of the 'parallel' grid axis.
    """
    tile = _PER_BUFFER_BYTES // max(padded_bytes_per_row, 1)
    tile = max(min_rows, (tile // multiple) * multiple)
    tile = min(tile, _round_up(rows_total, multiple))
    if rows_total > 2 * min_rows and pl.cdiv(rows_total, tile) < 2:
        tile = max(min_rows, _round_up(pl.cdiv(rows_total, 2), multiple))
    return tile


# ----------------------------- Pallas kernels ------------------------------ #

def _mse_rows_kernel(p_ref, t_ref, g_ref, o_ref):
    # p/t: (tile_r, 128) lane-dense element rows (K = 128/D vertices per row).
    # g  : (128, K) constant 0/1 group-sum matrix (column v sums that vertex's D lanes).
    # o  : (tile_r, K) per-vertex sums, accumulated in f32.
    p = p_ref[...].astype(jnp.float32)
    t = t_ref[...].astype(jnp.float32)
    d = p - t
    o_ref[...] = jnp.dot(d * d, g_ref[...], preferred_element_type=jnp.float32)


def _mse_vertex_kernel(p_ref, t_ref, o_ref):
    # p/t: (tile_v, D) per-vertex rows; o: (tile_v, 1) per-vertex sum over D.
    p = p_ref[...].astype(jnp.float32)
    t = t_ref[...].astype(jnp.float32)
    d = p - t
    o_ref[...] = jnp.sum(d * d, axis=-1, keepdims=True)


# ----------------------------- kernel wrappers ----------------------------- #

def _mse_lane_dense(pred, target):
    """Lane-dense path for D | 128: data viewed as [R, 128], dense DMA, MXU group-sum."""
    B, N, D = pred.shape
    K = _LANE // D
    R = (B * N) // K
    pred2 = pred.reshape(R, _LANE)        # free, contiguous reshape
    tgt2 = target.reshape(R, _LANE)
    gmat = jnp.asarray(np.repeat(np.eye(K, dtype=np.float32), D, axis=0))   # (128, K)

    itemsize = max(jnp.dtype(pred.dtype).itemsize, jnp.dtype(target.dtype).itemsize)
    tile_r = _pick_tile_rows(R, _LANE * itemsize)
    n_steps = pl.cdiv(R, tile_r)

    cost = pl.CostEstimate(
        flops=3 * B * N * D, transcendentals=0,
        bytes_accessed=B * N * D * (jnp.dtype(pred.dtype).itemsize
                                    + jnp.dtype(target.dtype).itemsize) + 4 * B * N)

    out = pl.pallas_call(
        _mse_rows_kernel,
        out_shape=jax.ShapeDtypeStruct((R, K), jnp.float32),
        grid_spec=pltpu.PrefetchScalarGridSpec(
            num_scalar_prefetch=0,
            grid=(n_steps,),
            in_specs=[
                pl.BlockSpec((tile_r, _LANE), lambda i: (i, 0)),
                pl.BlockSpec((tile_r, _LANE), lambda i: (i, 0)),
                pl.BlockSpec((_LANE, K), lambda i: (0, 0)),   # tiny constant, stays resident
            ],
            out_specs=pl.BlockSpec((tile_r, K), lambda i: (i, 0)),
        ),
        compiler_params=pltpu.CompilerParams(
            dimension_semantics=("parallel",),
            vmem_limit_bytes=_VMEM_LIMIT_BYTES),
        cost_estimate=cost,
    )(pred2, tgt2, gmat)
    return out.reshape(B, N)              # free, contiguous reshape back


def _mse_generic(pred, target):
    """Fallback path ([B*N, D] layout) for feature dims that do not divide 128."""
    B, N, D = pred.shape
    V = B * N
    pred2 = pred.reshape(V, D)
    tgt2 = target.reshape(V, D)

    itemsize = max(jnp.dtype(pred.dtype).itemsize, jnp.dtype(target.dtype).itemsize)
    padded_row_bytes = _round_up(D, _LANE) * itemsize      # budget against the padded footprint
    tile_v = _pick_tile_rows(V, padded_row_bytes)
    n_steps = pl.cdiv(V, tile_v)

    cost = pl.CostEstimate(
        flops=3 * B * N * D, transcendentals=0,
        bytes_accessed=B * N * D * (jnp.dtype(pred.dtype).itemsize
                                    + jnp.dtype(target.dtype).itemsize) + 4 * B * N)

    out = pl.pallas_call(
        _mse_vertex_kernel,
        out_shape=jax.ShapeDtypeStruct((V, 1), jnp.float32),
        grid_spec=pltpu.PrefetchScalarGridSpec(
            num_scalar_prefetch=0,
            grid=(n_steps,),
            in_specs=[
                pl.BlockSpec((tile_v, D), lambda i: (i, 0)),
                pl.BlockSpec((tile_v, D), lambda i: (i, 0)),
            ],
            out_specs=pl.BlockSpec((tile_v, 1), lambda i: (i, 0)),
        ),
        compiler_params=pltpu.CompilerParams(
            dimension_semantics=("parallel",),
            vmem_limit_bytes=_VMEM_LIMIT_BYTES),
        cost_estimate=cost,
    )(pred2, tgt2)
    return out.reshape(B, N)


def mse_vertex_error(pred, target):
    """Per-vertex sum over D of squared error. Returns [B, N] float32."""
    B, N, D = pred.shape
    if D <= _LANE and _LANE % D == 0 and (B * N) % (_LANE // D) == 0:
        return _mse_lane_dense(pred, target)
    # TODO(synk): feature dims that do not divide 128 (e.g. D=3 xyz positions) fall back
    # to the lane-padded per-vertex layout (128/D x VMEM inflation); same HBM traffic.
    return _mse_generic(pred, target)


# ------------------------------- glue code --------------------------------- #

@partial(jax.jit, static_argnames=("num_types",))
def _accuracy_mse_core(pred, label, indices, indices_type, vert_mask, num_types):
    """Jittable numeric core: returns (per-type means [T], per-type counts [T])."""
    B, N, D = pred.shape
    G = indices.shape[1] - 1

    # --- hot path: Pallas kernel, per-vertex sum_D((p-t)^2) -> [B, N] f32 ---
    err = mse_vertex_error(pred, label)

    # --- per-vertex mask applied post-reduction (mask is constant along D) ---
    if vert_mask is not None:
        vm = vert_mask
        if vm.ndim == 3:
            # TODO(synk): masks varying across the feature dim are not supported; a
            # per-vertex mask commutes with the D-sum, which is what we rely on here.
            vm = vm[..., 0]
        err = err * vm.astype(jnp.float32)

    # --- per-garment means via segment_sum (O(B*N); no [B,G,N] mask materialized) ---
    starts = indices[:, :-1]                                  # [B, G]
    ends = indices[:, 1:]                                     # [B, G]
    v_idx = jnp.arange(N, dtype=indices.dtype)                # [N]

    def batch_seg_ids(ends_b, first_b):
        g = jnp.searchsorted(ends_b, v_idx, side='right')     # garment id per vertex
        invalid = (v_idx < first_b) | (g >= G)                # outside all garment slices
        return jnp.where(invalid, G, g)                       # bucket G == dropped

    seg = jax.vmap(batch_seg_ids)(ends, indices[:, 0])        # [B, N]
    seg = seg + (jnp.arange(B, dtype=seg.dtype) * (G + 1))[:, None]
    seg_sum = jax.ops.segment_sum(err.reshape(B * N), seg.reshape(B * N),
                                  num_segments=B * (G + 1))
    seg_sum = seg_sum.reshape(B, G + 1)[:, :G]                # [B, G]

    # NOTE: the divisor intentionally counts masked-out vertices too; the mask only
    # zeroes the numerator, matching the PyTorch reference semantics.
    counts = ((ends - starts) * D).astype(jnp.float32)        # elements per garment slice
    g_err = seg_sum / counts                                  # == torch.mean(b_error[s:e])

    # --- group by garment type (argmax of one-hot) ---
    type_ids = jnp.argmax(indices_type, axis=-1)                          # [B, G]
    onehot = jax.nn.one_hot(type_ids, num_types, dtype=jnp.float32)       # [B, G, T]
    type_sums = jnp.einsum('bgt,bg->t', onehot, g_err)
    type_cnts = jnp.sum(onehot, axis=(0, 1))
    type_means = jnp.where(type_cnts > 0,
                           type_sums / jnp.maximum(type_cnts, 1.0),
                           jnp.zeros_like(type_sums))
    return type_means, type_cnts


def accuracy_mse(pred, label, indices, indices_type, type_names,
                 prefix='', reduction='mean', overwrite_align=False,
                 vert_mask=None, **kwargs):
    """JAX version of accuracy_mse for reduction='mean' (module default)."""
    if reduction == 'sum':
        # TODO(synk): reduction='sum' branch (appends raw per-vertex error tensors,
        # keyed by 'total') not implemented.
        raise NotImplementedError("Only reduction='mean' is supported.")

    T = len(type_names)
    type_means, type_cnts = _accuracy_mse_core(
        pred, label, indices, indices_type, vert_mask, num_types=T)

    # Single host sync to decide which dict keys exist; values stay on device.
    type_cnts_host = np.asarray(jax.device_get(type_cnts))

    acc_dict = {}
    for t, name in enumerate(type_names):
        key = f'{prefix}.{name}'
        if type_cnts_host[t] > 0:
            acc_dict[key] = type_means[t]
        elif not overwrite_align:
            acc_dict[key] = jnp.zeros((), jnp.float32)
    return acc_dict


class MSEAccuracy:
    """Module has no learnable parameters; only reduction / acc_name config."""

    def __init__(self, reduction='mean', acc_name='accuracy_l2', ratio=False):
        self.reduction = reduction
        self._acc_name = acc_name
        self.ratio = ratio

    def __call__(self, pred, target, indices, indices_type=None, type_names=(),
                 overwrite_align=False, vert_mask=None, **kwargs):
        return accuracy_mse(pred, target, indices, indices_type=indices_type,
                            type_names=list(type_names), prefix=self.acc_name,
                            reduction=self.reduction,
                            overwrite_align=overwrite_align,
                            vert_mask=vert_mask, ratio=self.ratio, **kwargs)

    @property
    def acc_name(self):
        return self._acc_name


# --------------------------- reference (numpy) ------------------------------ #

def _reference(pred, target, indices, indices_type, type_names, prefix,
               vert_mask=None):
    pred = np.asarray(pred, np.float64)
    target = np.asarray(target, np.float64)
    indices = np.asarray(indices)
    indices_type = np.asarray(indices_type)
    d = defaultdict(list)
    for b in range(pred.shape[0]):
        err = (pred[b] - target[b]) ** 2
        if vert_mask is not None:
            err = err * np.asarray(vert_mask, np.float64)[b]
        b_ind, b_type = indices[b], indices_type[b]
        for i in range(1, b_ind.shape[0]):
            tidx = int(np.argmax(b_type[i - 1]))
            s, e = int(b_ind[i - 1]), int(b_ind[i])
            d[type_names[tidx]].append(err[s:e].mean())
    out = {f'{prefix}.{k}': float(np.mean(v)) for k, v in d.items()}
    for t in type_names:
        out.setdefault(f'{prefix}.{t}', 0.0)
    return out


# --------------------------------- demo -------------------------------------- #

if __name__ == "__main__":
    type_names = ['shirt', 'pants', 'skirt', 'dress']
    T = len(type_names)
    key = jax.random.PRNGKey(0)
    k1, k2, k3, k4, k5 = jax.random.split(key, 5)

    def quant(k, shape):
        # Values are multiples of 1/4 in [-2, 2): squared diffs stay exactly
        # representable even at reduced MXU precision, so the checks are tight.
        return (jax.random.randint(k, shape, -8, 9) / 4.0).astype(jnp.float32)

    module = MSEAccuracy(reduction='mean', acc_name='accuracy_l2')

    # --- case 1: D divides 128 -> lane-dense kernel path ---
    B, N, D = 2, 256, 32
    pred = quant(k1, (B, N, D))
    target = quant(k2, (B, N, D))
    indices = jnp.array([[0, 80, 160, N], [0, 96, 200, N]], jnp.int32)     # [B, G+1]
    type_ids_np = np.array([[0, 1, 2], [0, 3, 1]], np.int32)               # [B, G]
    indices_type = jnp.asarray(np.eye(T, dtype=np.float32)[type_ids_np])   # [B, G, T]

    acc = module(pred, target, indices, indices_type=indices_type,
                 type_names=type_names)
    acc = jax.tree_util.tree_map(jax.block_until_ready, acc)
    ref = _reference(pred, target, indices, indices_type, type_names, 'accuracy_l2')
    for k in ref:
        np.testing.assert_allclose(float(acc[k]), ref[k], rtol=1e-5, atol=1e-6)

    # --- case 2: per-vertex mask [B, N, 1] ---
    vert_mask = (jax.random.uniform(k3, (B, N, 1)) > 0.3).astype(jnp.float32)
    acc_m = module(pred, target, indices, indices_type=indices_type,
                   type_names=type_names, vert_mask=vert_mask)
    acc_m = jax.tree_util.tree_map(jax.block_until_ready, acc_m)
    ref_m = _reference(pred, target, indices, indices_type, type_names,
                       'accuracy_l2', vert_mask=np.asarray(vert_mask))
    for k in ref_m:
        np.testing.assert_allclose(float(acc_m[k]), ref_m[k], rtol=1e-5, atol=1e-6)

    # --- case 3: D that does not divide 128 (xyz positions) -> generic path ---
    B2, N2, D2 = 1, 200, 3
    pred2 = quant(k4, (B2, N2, D2))
    target2 = quant(k5, (B2, N2, D2))
    indices2 = jnp.array([[0, 50, 120, N2]], jnp.int32)
    type_ids2 = np.array([[1, 0, 3]], np.int32)
    indices_type2 = jnp.asarray(np.eye(T, dtype=np.float32)[type_ids2])
    acc2 = module(pred2, target2, indices2, indices_type=indices_type2,
                  type_names=type_names)
    acc2 = jax.tree_util.tree_map(jax.block_until_ready, acc2)
    ref2 = _reference(pred2, target2, indices2, indices_type2, type_names,
                      'accuracy_l2')
    for k in ref2:
        np.testing.assert_allclose(float(acc2[k]), ref2[k], rtol=1e-5, atol=1e-6)

    print("KERNEL_OK")
</pallas_src>

<mosaic_0001>
module attributes {stable_mosaic.version = 11 : i64} {
  func.func private @main(%arg0: i32) attributes {dimension_semantics = [#tpu.dimension_semantics<core_parallel>], iteration_bounds = array<i64: 2>, tpu.core_type = #tpu.core_type<sc_scalar_subcore>, window_params = []} {
    return
  }
}

module attributes {stable_mosaic.version = 11 : i64} {
  func.func private @main(%arg0: i32) attributes {dimension_semantics = [#tpu.dimension_semantics<core_parallel>], iteration_bounds = array<i64: 2>, tpu.core_type = #tpu.core_type<sc_scalar_subcore>, window_params = []} {
    return
  }
}

module attributes {stable_mosaic.version = 11 : i64} {
  func.func @_mse_rows_kernel(%arg0: i32, %arg1: memref<64x128xf32, #tpu.memory_space<vmem>>, %arg2: memref<64x128xf32, #tpu.memory_space<vmem>>, %arg3: memref<128x4xf32, #tpu.memory_space<vmem>>, %arg4: memref<64x4xf32, #tpu.memory_space<vmem>>) attributes {dimension_semantics = [#tpu.dimension_semantics<parallel>], iteration_bounds = array<i64: 2>, scalar_prefetch = 0 : i64, scratch_operands = 0 : i64, tpu.core_type = #tpu.core_type<tc>, window_params = [{transform_indices = @transform_0, window_bounds = array<i64: 64, 128>}, {transform_indices = @transform_1, window_bounds = array<i64: 64, 128>}, {pipeline_mode = #tpu.pipeline_mode<synchronous>, transform_indices = @transform_2, window_bounds = array<i64: 128, 4>}, {transform_indices = @transform_3, window_bounds = array<i64: 64, 4>}]} {
    %c0 = arith.constant 0 : index
    %c0_0 = arith.constant 0 : index
    %0 = vector.load %arg1[%c0, %c0_0] : memref<64x128xf32, #tpu.memory_space<vmem>>, vector<64x128xf32>
    %c0_1 = arith.constant 0 : index
    %c0_2 = arith.constant 0 : index
    %1 = vector.load %arg2[%c0_1, %c0_2] : memref<64x128xf32, #tpu.memory_space<vmem>>, vector<64x128xf32>
    %2 = arith.subf %0, %1 : vector<64x128xf32>
    %3 = arith.mulf %2, %2 : vector<64x128xf32>
    %c0_3 = arith.constant 0 : index
    %c0_4 = arith.constant 0 : index
    %4 = vector.load %arg3[%c0_3, %c0_4] : memref<128x4xf32, #tpu.memory_space<vmem>>, vector<128x4xf32>
    %cst = arith.constant dense<0.000000e+00> : vector<64x4xf32>
    %5 = tpu.matmul %3, %4, %cst {dimension_numbers = #tpu.dot_dimension_numbers<[1], [0], [0], [1], [0, 0, 1, 1], [], []>} : vector<64x128xf32>, vector<128x4xf32>, vector<64x4xf32> -> vector<64x4xf32>
    %c0_5 = arith.constant 0 : index
    %c0_6 = arith.constant 0 : index
    %6 = vector.load %arg4[%c0_5, %c0_6] : memref<64x4xf32, #tpu.memory_space<vmem>>, vector<64x4xf32>
    tpu.vector_store %arg4[%c0_5, %c0_6], %5 {strides = array<i32>} : memref<64x4xf32, #tpu.memory_space<vmem>>, vector<64x4xf32>,
    return
  }
  func.func @transform_0(%arg0: i32) -> (i32, i32) {
    %c0_i32 = arith.constant 0 : i32
    %c0_i32_0 = arith.constant 0 : i32
    return %arg0, %c0_i32 : i32, i32
  }
  func.func @transform_1(%arg0: i32) -> (i32, i32) {
    %c0_i32 = arith.constant 0 : i32
    %c0_i32_0 = arith.constant 0 : i32
    return %arg0, %c0_i32 : i32, i32
  }
  func.func @transform_2(%arg0: i32) -> (i32, i32) {
    %c0_i32 = arith.constant 0 : i32
    %c0_i32_0 = arith.constant 0 : i32
    %c0_i32_1 = arith.constant 0 : i32
    return %c0_i32, %c0_i32_0 : i32, i32
  }
  func.func @transform_3(%arg0: i32) -> (i32, i32) {
    %c0_i32 = arith.constant 0 : i32
    %c0_i32_0 = arith.constant 0 : i32
    return %arg0, %c0_i32 : i32, i32
  }
}

</mosaic_0001>

<bundles_post_ra>
// kernel: custom-call.2
= control target key start
LH: loop header
LB: loop body
LE: loop exit
PB: predicated region body
PF: predicated region fallthrough
CT: control target
= control target key end

     0   :  { %s6_s0 = inlined_call_operand.vmem [shape: u32[2,256], index: 0, kind: output, shape index: {}]  }

// kernel: squeeze.7
= control target key start
LH: loop header
LB: loop body
LE: loop exit
PB: predicated region body
PF: predicated region fallthrough
CT: control target
= control target key end

     0   :  { %s45_s0 = inlined_call_operand.vmem [shape: s32[512], index: 0, kind: input, shape index: {}]   ;;  %s46_s1 = inlined_call_operand.vmem [shape: s32[2,256], index: 1, kind: output, shape index: {}]  }
   0x1   :  { %v5_v0 = vld [vmem:[%s45_s0] sm:$0xf] }
   0x2   :  { %6 = vst [vmem:[#allocation1] sm:$0xf] %v5_v0 }
   0x9   :  { %v7_v1 = vld [vmem:[#allocation1] sm:$0xf]  }
   0xa   :  { %8 = vst [vmem:[#allocation0] ss:$8 sm:$0x3] %v7_v1   ;;  %10 = vst [vmem:[#allocation0 - $0xf] ss:$8 sm:$0xc] %v7_v1  }
  0x11   :  { %v15_v2 = vld [vmem:[#allocation0] sm:$0x3]  ;;  %v20_v3 = vld [vmem:[#allocation0 + $0x8] sm:$0x3] }
  0x12   :  { %18 = vst [vmem:[%s46_s1] sm:$0x3] %v15_v2  ;;  %25 = vst [vmem:[%s46_s1 + $0x2] sm:$0x3] %v20_v3 }

// kernel: _accuracy_mse_core.1
= control target key start
LH: loop header
LB: loop body
LE: loop exit
PB: predicated region body
PF: predicated region fallthrough
CT: control target
= control target key end

     0   :  { %s575_s12 = smov 0   ;;  %s676_s0 = inlined_call_operand.vmem [shape: f32[128,128], index: 0, kind: input, shape index: {}]   ;;  %s677_s1 = inlined_call_operand.vmem [shape: f32[128,128], index: 1, kind: input, shape index: {}]   ;;  %s678_s2 = inlined_call_operand.vmem [shape: f32[128,4], index: 2, kind: input, shape index: {}]   ;;  %s679_s3 = inlined_call_operand.vmem [shape: f32[128,4], index: 3, kind: output, shape index: {}]  }
   0x1 LB: > { %s426_s13 = sadd.s32 4294967295, %s553_s12   ;;  %p430_p0 = scmp.ge.s32.totalorder %s553_s12, 1  ;;  %s553_s12 = sphi %s575_s12, %s13_s12  }
   0x2   : > { %p149_p1 = scmp.lt.s32.totalorder %s553_s12, 3 }
   0x4   : > { %p150_p2 = pnand %p430_p0, %p149_p1 }
   0x5   : > { %s431_s22 = sshll.u32 (!%p150_p2), %s426_s13, 3 }
   0x6   : > { %153 = sbr.rel (%p150_p2) target bundleno = 245 (0xf5), region = 32  ;;  %p179_p3 = scmp.lt.s32.totalorder (!%p150_p2), %s431_s22, 15 }
   0xb   : > { %v243_v0 = vld [vmem:[%s678_s2 + $0x78] sm:$0xff]  ;;  %v242_v1 = vld [vmem:[%s678_s2 + $0x70] sm:$0xff]  ;;  %v241_v2 = vld [vmem:[%s678_s2 + $0x68] sm:$0xff]  ;;  %s681_s22 = smov (!%p179_p3, %s431_s22), 15  ;;  %vm349_vm0 = vcmask 31744  }
   0xc   : > { %463 = vmatprep.subr.mxu0 %v243_v0  ;;  %507 = vmatprep.subr.mxu1 %v243_v0  ;;  %v240_v3 = vld [vmem:[%s678_s2 + $0x60] sm:$0xff]  ;;  %v239_v4 = vld [vmem:[%s678_s2 + $0x58] sm:$0xff]  ;;  %v238_v5 = vld [vmem:[%s678_s2 + $0x50] sm:$0xff]  ;;  %s610_s6 = sshll.u32 %s681_s22, 3 }
   0xd   : > { %464 = vmatpush3.msra.mxu0 %v243_v0  ;;  %523 = vmatpush3.msra.mxu1 %v243_v0  ;;  %v237_v6 = vld [vmem:[%s678_s2 + $0x48] sm:$0xff]  ;;  %v236_v7 = vld [vmem:[%s678_s2 + $0x40] sm:$0xff]  ;;  %v235_v8 = vld [vmem:[%s678_s2 + $0x38] sm:$0xff]  ;;  %s622_s14 = scalar_lea.vmem %s676_s0, %s610_s6  ;;  %s628_s17 = scalar_lea.vmem %s677_s1, %s610_s6 }
   0xe   : > { %465 = vmatprep.subr.mxu0 %v242_v1  ;;  %508 = vmatprep.subr.mxu1 %v242_v1  ;;  %v234_v9 = vld [vmem:[%s678_s2 + $0x30] sm:$0xff]  ;;  %v233_v10 = vld [vmem:[%s678_s2 + $0x28] sm:$0xff]  ;;  %v232_v11 = vld [vmem:[%s678_s2 + $0x20] sm:$0xff]  ;;  %s194_s30 = scalar_lea.vmem %s679_s3, %s610_s6 }
   0xf   : > { %466 = vmatpush3.msra.mxu0 %v242_v1  ;;  %524 = vmatpush3.msra.mxu1 %v242_v1  ;;  %v231_v12 = vld [vmem:[%s678_s2 + $0x18] sm:$0xff]  ;;  %v196_v13 = vld [vmem:[%s622_s14] sm:$0xff]  ;;  %v230_v16 = vld [vmem:[%s678_s2 + $0x10] sm:$0xff] }
  0x10   : > { %467 = vmatprep.subr.mxu0 %v241_v2  ;;  %509 = vmatprep.subr.mxu1 %v241_v2  ;;  %v204_v14 = vld [vmem:[%s628_s17] sm:$0xff]  ;;  %v197_v18 = vld [vmem:[%s622_s14 + $0x8] sm:$0xff]  ;;  %v198_v22 = vld [vmem:[%s622_s14 + $0x10] sm:$0xff] }
  0x11   : > { %468 = vmatpush3.msra.mxu0 %v241_v2  ;;  %525 = vmatpush3.msra.mxu1 %v241_v2  ;;  %v200_v15 = vld [vmem:[%s622_s14 + $0x20] sm:$0xff]  ;;  %v205_v19 = vld [vmem:[%s628_s17 + $0x8] sm:$0xff]  ;;  %v206_v23 = vld [vmem:[%s628_s17 + $0x10] sm:$0xff]  ;;  %v212_v26 = vsub.f32 %v196_v13, %v204_v14 }
  0x12   : > { %469 = vmatprep.subr.mxu0 %v240_v3  ;;  %510 = vmatprep.subr.mxu1 %v240_v3  ;;  %v208_v17 = vld [vmem:[%s628_s17 + $0x20] sm:$0xff]  ;;  %v201_v20 = vld [vmem:[%s622_s14 + $0x28] sm:$0xff]  ;;  %v202_v24 = vld [vmem:[%s622_s14 + $0x30] sm:$0xff]  ;;  %v213_v28 = vsub.f32 %v197_v18, %v205_v19  ;;  %v214_v32 = vsub.f32 %v198_v22, %v206_v23 }
  0x13   : > { %470 = vmatpush3.msra.mxu0 %v240_v3  ;;  %526 = vmatpush3.msra.mxu1 %v240_v3  ;;  %v209_v21 = vld [vmem:[%s628_s17 + $0x28] sm:$0xff]  ;;  %v210_v25 = vld [vmem:[%s628_s17 + $0x30] sm:$0xff]  ;;  %v216_v27 = vsub.f32 %v200_v15, %v208_v17  ;;  %v199_v31 = vld [vmem:[%s622_s14 + $0x18] sm:$0xff]  ;;  %v220_v38 = vmul.f32 %v212_v26, %v212_v26 }
  0x14   : > { %471 = vmatprep.subr.mxu0 %v239_v4  ;;  %511 = vmatprep.subr.mxu1 %v239_v4  ;;  %v229_v29 = vld [vmem:[%s678_s2 + $0x8] sm:$0xff]  ;;  %v217_v30 = vsub.f32 %v201_v20, %v209_v21  ;;  %v218_v33 = vsub.f32 %v202_v24, %v210_v25  ;;  %v207_v34 = vld [vmem:[%s628_s17 + $0x18] sm:$0xff]  ;;  %v228_v37 = vld [vmem:[%s678_s2] sm:$0xff]  ;;  %v221_v40 = vmul.f32 %v213_v28, %v213_v28 }
  0x15   : > { %472 = vmatpush3.msra.mxu0 %v239_v4  ;;  %527 = vmatpush3.msra.mxu1 %v239_v4  ;;  %v203_v35 = vld [vmem:[%s622_s14 + $0x38] sm:$0xff]  ;;  %v224_v39 = vmul.f32 %v216_v27, %v216_v27  ;;  %v215_v42 = vsub.f32 %v199_v31, %v207_v34  ;;  %v222_v44 = vmul.f32 %v214_v32, %v214_v32 }
  0x16   : > { %473 = vmatprep.subr.mxu0 %v238_v5  ;;  %512 = vmatprep.subr.mxu1 %v238_v5  ;;  %v211_v36 = vld [vmem:[%s628_s17 + $0x38] sm:$0xff]  ;;  %v225_v41 = vmul.f32 %v217_v30, %v217_v30  ;;  %v226_v45 = vmul.f32 %v218_v33, %v218_v33 }
  0x17   : > { %474 = vmatpush3.msra.mxu0 %v238_v5  ;;  %528 = vmatpush3.msra.mxu1 %v238_v5  ;;  %v219_v43 = vsub.f32 %v203_v35, %v211_v36  ;;  %v223_v46 = vmul.f32 %v215_v42, %v215_v42 }
  0x18   : > { %475 = vmatprep.subr.mxu0 %v237_v6  ;;  %513 = vmatprep.subr.mxu1 %v237_v6 }
  0x19   : > { %476 = vmatpush3.msra.mxu0 %v237_v6  ;;  %529 = vmatpush3.msra.mxu1 %v237_v6  ;;  %v227_v47 = vmul.f32 %v219_v43, %v219_v43 }
  0x1a   : > { %477 = vmatprep.subr.mxu0 %v236_v7  ;;  %514 = vmatprep.subr.mxu1 %v236_v7 }
  0x1b   : > { %478 = vmatpush3.msra.mxu0 %v236_v7  ;;  %530 = vmatpush3.msra.mxu1 %v236_v7 }
  0x1c   : > { %479 = vmatprep.subr.mxu0 %v235_v8  ;;  %515 = vmatprep.subr.mxu1 %v235_v8 }
  0x1d   : > { %480 = vmatpush3.msra.mxu0 %v235_v8  ;;  %531 = vmatpush3.msra.mxu1 %v235_v8 }
  0x1e   : > { %481 = vmatprep.subr.mxu0 %v234_v9  ;;  %516 = vmatprep.subr.mxu1 %v234_v9 }
  0x1f   : > { %482 = vmatpush3.msra.mxu0 %v234_v9  ;;  %532 = vmatpush3.msra.mxu1 %v234_v9 }
  0x20   : > { %483 = vmatprep.subr.mxu0 %v233_v10  ;;  %517 = vmatprep.subr.mxu1 %v233_v10 }
  0x21   : > { %484 = vmatpush3.msra.mxu0 %v233_v10  ;;  %533 = vmatpush3.msra.mxu1 %v233_v10 }
  0x22   : > { %485 = vmatprep.subr.mxu0 %v232_v11  ;;  %518 = vmatprep.subr.mxu1 %v232_v11 }
  0x23   : > { %486 = vmatpush3.msra.mxu0 %v232_v11  ;;  %534 = vmatpush3.msra.mxu1 %v232_v11 }
  0x24   : > { %487 = vmatprep.subr.mxu0 %v231_v12  ;;  %519 = vmatprep.subr.mxu1 %v231_v12 }
  0x25   : > { %488 = vmatpush3.msra.mxu0 %v231_v12  ;;  %535 = vmatpush3.msra.mxu1 %v231_v12 }
  0x26   : > { %489 = vmatprep.subr.mxu0 %v230_v16  ;;  %520 = vmatprep.subr.mxu1 %v230_v16 }
  0x27   : > { %490 = vmatpush3.msra.mxu0 %v230_v16  ;;  %536 = vmatpush3.msra.mxu1 %v230_v16 }
  0x28   : > { %491 = vmatprep.subr.mxu0 %v229_v29  ;;  %521 = vmatprep.subr.mxu1 %v229_v29 }
  0x29   : > { %492 = vmatpush3.msra.mxu0 %v229_v29  ;;  %537 = vmatpush3.msra.mxu1 %v229_v29 }
  0x2a   : > { %493 = vmatprep.subr.mxu0 %v228_v37  ;;  %522 = vmatprep.subr.mxu1 %v228_v37 }
  0x2b   : > { %494 = vmatpush3.msra.mxu0 %v228_v37  ;;  %538 = vmatpush3.msra.mxu1 %v228_v37 }
  0x2c   : > { %495 = vmatprep.mubr.f32.mxu0 %v220_v38  ;;  %501 = vmatprep.mubr.f32.mxu1 %v224_v39 }
  0x2d   : > { %496 = vmatmul.mubr.f32.vlgmr.msra.gmra.mxu0 %v221_v40  ;;  %502 = vmatmul.mubr.f32.vlgmr.msra.gmra.mxu1 %v225_v41 }
  0x2e   : > { %498 = vmatprep.mubr.f32.mxu0 %v222_v44  ;;  %504 = vmatprep.mubr.f32.mxu1 %v226_v45 }
  0x31   : > { %499 = vmatmul.mubr.f32.gmra.mxu0 %v223_v46  ;;  %505 = vmatmul.mubr.f32.gmra.mxu1 %v227_v47 }
  0xed   : > { %v497_v48 = vpop.f32.mrf.mxu0  ;;  %v503_v49 = vpop.f32.mrf.mxu1 }
  0xee   : > { %351 = vst.msk [vmem:[%s194_s30 + $0x8] sm:$0xff] %vm349_vm0, %v497_v48  ;;  %355 = vst.msk [vmem:[%s194_s30 + $0x28] sm:$0xff] %vm349_vm0, %v503_v49 }
  0xef   : > { %v310_v50 = vpop.f32.mrf.mxu0  ;;  %v330_v51 = vpop.f32.mrf.mxu1 }
  0xf0   : > { %350 = vst.msk [vmem:[%s194_s30] sm:$0xff] %vm349_vm0, %v310_v50  ;;  %354 = vst.msk [vmem:[%s194_s30 + $0x20] sm:$0xff] %vm349_vm0, %v330_v51 }
  0xf1   : > { %v500_v52 = vpop.f32.mrf.mxu0  ;;  %v506_v53 = vpop.f32.mrf.mxu1 }
  0xf2   : > { %353 = vst.msk [vmem:[%s194_s30 + $0x18] sm:$0xff] %vm349_vm0, %v500_v52  ;;  %357 = vst.msk [vmem:[%s194_s30 + $0x38] sm:$0xff] %vm349_vm0, %v506_v53 }
  0xf3   : > { %v320_v54 = vpop.f32.mrf.mxu0  ;;  %v340_v55 = vpop.f32.mrf.mxu1 }
  0xf4   : > { %352 = vst.msk [vmem:[%s194_s30 + $0x10] sm:$0xff] %vm349_vm0, %v320_v54  ;;  %356 = vst.msk [vmem:[%s194_s30 + $0x30] sm:$0xff] %vm349_vm0, %v340_v55 }
  0xf5 PF: > { %s13_s12 = sadd.s32 1, %s553_s12  }
  0xf6   : > { %p10_p4 = scmp.ge.s32.totalorder %s13_s12, 4  }
  0xf8   :  { %12 = sbr.rel (!%p10_p4) target bundleno = 1 (0x1), region = 65 }

</bundles_post_ra>
